<compile_context>
chip_gen: v7x
topology: tpu7x:2x2x1
jax: 0.10.0
libtpu: 0.0.40
codegen_flags: <defaults>
</compile_context>

<pallas_src>
import functools

import jax
import jax.numpy as jnp
from jax import lax
from jax.experimental import pallas as pl
from jax.experimental.pallas import tpu as pltpu


def _round_up(x, m):
    return (x + m - 1) // m * m


def _bigram_logits_kernel(idx_ref, emb_ref, out_ref):
    # idx_ref: (TM, 1) int32; emb_ref: (VP, VP) f32; out_ref: (TM, VP) f32
    tm, vp = out_ref.shape
    idx = idx_ref[...]                                       # (TM, 1)
    class_iota = lax.broadcasted_iota(jnp.int32, (tm, vp), 1)
    one_hot = (idx == class_iota).astype(jnp.float32)        # (TM, VP)
    out_ref[...] = jnp.dot(one_hot, emb_ref[...],
                           preferred_element_type=jnp.float32)


def _bigram_loss_kernel(idx_ref, tgt_ref, emb_ref, out_ref, *, num_classes):
    # idx_ref/tgt_ref: (TM, 1) int32; emb_ref: (VP, VP) f32; out_ref: (TM, VP) f32
    # out columns [0, num_classes) hold logits; column num_classes holds the
    # per-row cross-entropy term (lse - picked); remaining padded columns are 0.
    tm, vp = out_ref.shape
    idx = idx_ref[...]                                       # (TM, 1)
    tgt = tgt_ref[...]                                       # (TM, 1)
    class_iota = lax.broadcasted_iota(jnp.int32, (tm, vp), 1)

    one_hot = (idx == class_iota).astype(jnp.float32)        # (TM, VP)
    logits = jnp.dot(one_hot, emb_ref[...],
                     preferred_element_type=jnp.float32)     # (TM, VP)

    # Stable logsumexp over the real classes only (padded cols masked to -inf).
    valid_col = class_iota < num_classes
    masked = jnp.where(valid_col, logits, -jnp.inf)
    m = jnp.max(masked, axis=-1, keepdims=True)              # (TM, 1)
    lse = jnp.log(jnp.sum(jnp.exp(masked - m), axis=-1, keepdims=True)) + m

    # picked = logits[row, tgt[row]] without materializing a float one-hot.
    picked = jnp.sum(jnp.where(tgt == class_iota, logits, 0.0),
                     axis=-1, keepdims=True)                 # (TM, 1)
    per_row = lse - picked                                   # (TM, 1)

    # Stash the per-row loss term in the first padded column (lane num_classes);
    # keeps the store lane-dense and avoids any cross-tile accumulator.
    out_ref[...] = jnp.where(class_iota == num_classes, per_row, logits)


def bigram_forward(idx, emb_table, targets=None, *, tile_rows=512):
    """Pallas implementation of BigramLngModel.forward.

    idx: (B, T) int; emb_table: (V, V) float; targets: (B, T) int or None.
    Returns (logits, loss): logits is (B, T, V) if targets is None, else (B*T, V);
    loss is None if targets is None, else a float32 scalar (mean cross-entropy).
    """
    B, T = idx.shape
    V = emb_table.shape[0]
    N = B * T
    compute_loss = targets is not None

    # Pad class dim to a lane-dense width; reserve one spare column for the
    # per-row loss term when targets are given.
    VP = _round_up(V + 1, 128) if compute_loss else _round_up(V, 128)

    # Row tile. 512 fits all generations comfortably (v7x has half the VMEM of
    # v5e/v6e); can be raised to 1024-2048 on v5e/v6e. Shrink for tiny N.
    TM = min(tile_rows, _round_up(N, 8))
    N_pad = _round_up(N, TM)
    G = N_pad // TM

    idx_flat = jnp.zeros((N_pad, 1), jnp.int32).at[:N, 0].set(
        idx.reshape(N).astype(jnp.int32))
    emb_pad = jnp.zeros((VP, VP), jnp.float32).at[:V, :V].set(
        emb_table.astype(jnp.float32))
    # TODO(synk): at very large TM, pack idx/tgt lane-dense instead of the
    # lane-padded (TM, 1) layout to save VMEM (mostly matters on v7x).

    idx_spec = pl.BlockSpec((TM, 1), lambda i: (i, 0))
    tgt_spec = pl.BlockSpec((TM, 1), lambda i: (i, 0))
    emb_spec = pl.BlockSpec((VP, VP), lambda i: (0, 0))      # pinned, re-used
    out_spec = pl.BlockSpec((TM, VP), lambda i: (i, 0))
    out_shape = jax.ShapeDtypeStruct((N_pad, VP), jnp.float32)
    cparams = pltpu.CompilerParams(dimension_semantics=("parallel",))

    if not compute_loss:
        cost = pl.CostEstimate(
            flops=2 * N_pad * VP * VP,
            transcendentals=0,
            bytes_accessed=N_pad * 4 + VP * VP * 4 + N_pad * VP * 4)
        out = pl.pallas_call(
            _bigram_logits_kernel,
            grid=(G,),
            in_specs=[idx_spec, emb_spec],
            out_specs=out_spec,
            out_shape=out_shape,
            compiler_params=cparams,
            cost_estimate=cost,
        )(idx_flat, emb_pad)
        return out[:N, :V].reshape(B, T, V), None

    tgt_flat = jnp.zeros((N_pad, 1), jnp.int32).at[:N, 0].set(
        targets.reshape(N).astype(jnp.int32))
    cost = pl.CostEstimate(
        flops=2 * N_pad * VP * VP + 8 * N_pad * VP,
        transcendentals=2 * N_pad * VP,
        bytes_accessed=2 * N_pad * 4 + VP * VP * 4 + N_pad * VP * 4)
    out = pl.pallas_call(
        functools.partial(_bigram_loss_kernel, num_classes=V),
        grid=(G,),
        in_specs=[idx_spec, tgt_spec, emb_spec],
        out_specs=out_spec,
        out_shape=out_shape,
        compiler_params=cparams,
        cost_estimate=cost,
    )(idx_flat, tgt_flat, emb_pad)

    logits = out[:N, :V]
    loss = jnp.sum(out[:N, V]) / N   # mean over B*T rows, matches F.cross_entropy
    return logits, loss


if __name__ == "__main__":
    key = jax.random.PRNGKey(0)
    k_emb, k_idx, k_tgt = jax.random.split(key, 3)

    vocab_size = 65   # tiny-Shakespeare char vocab size
    B, T = 2, 8

    # nn.Embedding default init: N(0, 1)
    emb_table = jax.random.normal(k_emb, (vocab_size, vocab_size), jnp.float32)
    idx = jax.random.randint(k_idx, (B, T), 0, vocab_size, jnp.int32)
    targets = jax.random.randint(k_tgt, (B, T), 0, vocab_size, jnp.int32)

    # Forward with targets (logits flattened to (B*T, V), scalar loss).
    logits, loss = bigram_forward(idx, emb_table, targets)
    jax.block_until_ready((logits, loss))

    # Forward without targets (logits (B, T, V), loss None) -- generate() path.
    logits_nt, loss_nt = bigram_forward(idx, emb_table, None)
    jax.block_until_ready(logits_nt)

    # Sanity check against plain-JAX reference.
    ref_logits = emb_table[idx.reshape(-1)]
    ref_lse = jax.nn.logsumexp(ref_logits, axis=-1)
    ref_picked = jnp.take_along_axis(
        ref_logits, targets.reshape(-1, 1), axis=-1)[:, 0]
    ref_loss = jnp.mean(ref_lse - ref_picked)
    assert jnp.allclose(logits, ref_logits, atol=1e-5)
    assert jnp.allclose(loss, ref_loss, atol=1e-5)
    assert loss_nt is None and logits_nt.shape == (B, T, vocab_size)
    assert jnp.allclose(logits_nt.reshape(-1, vocab_size), ref_logits, atol=1e-5)

    # TODO(synk): generate() (autoregressive multinomial sampling loop) is host-side
    # control flow, not a kernel hot path; omitted.
    print("KERNEL_OK")
</pallas_src>

<mosaic_0001>
module attributes {stable_mosaic.version = 11 : i64} {
  func.func @_bigram_loss_kernel(%arg0: i32, %arg1: memref<16x1xi32, #tpu.memory_space<vmem>>, %arg2: memref<16x1xi32, #tpu.memory_space<vmem>>, %arg3: memref<128x128xf32, #tpu.memory_space<vmem>>, %arg4: memref<16x128xf32, #tpu.memory_space<vmem>>) attributes {dimension_semantics = [#tpu.dimension_semantics<parallel>], iteration_bounds = array<i64: 1>, scalar_prefetch = 0 : i64, scratch_operands = 0 : i64, tpu.core_type = #tpu.core_type<tc>, window_params = [{transform_indices = @transform_0, window_bounds = array<i64: 16, 1>}, {transform_indices = @transform_1, window_bounds = array<i64: 16, 1>}, {pipeline_mode = #tpu.pipeline_mode<synchronous>, transform_indices = @transform_2, window_bounds = array<i64: 128, 128>}, {transform_indices = @transform_3, window_bounds = array<i64: 16, 128>}]} {
    %c0 = arith.constant 0 : index
    %c0_0 = arith.constant 0 : index
    %0 = vector.load %arg1[%c0, %c0_0] : memref<16x1xi32, #tpu.memory_space<vmem>>, vector<16x1xi32>
    %c0_1 = arith.constant 0 : index
    %c0_2 = arith.constant 0 : index
    %1 = vector.load %arg2[%c0_1, %c0_2] : memref<16x1xi32, #tpu.memory_space<vmem>>, vector<16x1xi32>
    %2 = tpu.iota {dimensions = array<i32: 1>} : vector<16x128xi32>
    %3 = vector.broadcast %0 : vector<16x1xi32> to vector<16x128xi32>
    %4 = arith.cmpi eq, %3, %2 : vector<16x128xi32>
    %5 = arith.extui %4 : vector<16x128xi1> to vector<16x128xi32>
    %6 = arith.sitofp %5 : vector<16x128xi32> to vector<16x128xf32>
    %c0_3 = arith.constant 0 : index
    %c0_4 = arith.constant 0 : index
    %7 = vector.load %arg3[%c0_3, %c0_4] : memref<128x128xf32, #tpu.memory_space<vmem>>, vector<128x128xf32>
    %cst = arith.constant dense<0.000000e+00> : vector<16x128xf32>
    %8 = tpu.matmul %6, %7, %cst {dimension_numbers = #tpu.dot_dimension_numbers<[1], [0], [0], [1], [0, 0, 1, 1], [], []>} : vector<16x128xf32>, vector<128x128xf32>, vector<16x128xf32> -> vector<16x128xf32>
    %c65_i32 = arith.constant 65 : i32
    %9 = vector.broadcast %c65_i32 : i32 to vector<16x128xi32>
    %10 = arith.cmpi slt, %2, %9 : vector<16x128xi32>
    %cst_5 = arith.constant 0xFF800000 : f32
    %11 = vector.broadcast %cst_5 : f32 to vector<16x128xf32>
    %12 = arith.select %10, %8, %11 : vector<16x128xi1>, vector<16x128xf32>
    %cst_6 = arith.constant dense<0xFF800000> : vector<16xf32>
    %13 = vector.multi_reduction <maximumf>, %12, %cst_6 [1] : vector<16x128xf32> to vector<16xf32>
    %14 = vector.shape_cast %13 : vector<16xf32> to vector<16x1xf32>
    %15 = vector.broadcast %14 : vector<16x1xf32> to vector<16x128xf32>
    %16 = arith.subf %12, %15 : vector<16x128xf32>
    %17 = math.exp %16 : vector<16x128xf32>
    %cst_7 = arith.constant dense<0.000000e+00> : vector<16xf32>
    %18 = vector.multi_reduction <add>, %17, %cst_7 [1] : vector<16x128xf32> to vector<16xf32>
    %19 = vector.shape_cast %18 : vector<16xf32> to vector<16x1xf32>
    %20 = math.log %19 : vector<16x1xf32>
    %21 = arith.addf %20, %14 : vector<16x1xf32>
    %22 = vector.broadcast %1 : vector<16x1xi32> to vector<16x128xi32>
    %23 = arith.cmpi eq, %22, %2 : vector<16x128xi32>
    %cst_8 = arith.constant 0.000000e+00 : f32
    %24 = vector.broadcast %cst_8 : f32 to vector<16x128xf32>
    %25 = arith.select %23, %8, %24 : vector<16x128xi1>, vector<16x128xf32>
    %cst_9 = arith.constant dense<0.000000e+00> : vector<16xf32>
    %26 = vector.multi_reduction <add>, %25, %cst_9 [1] : vector<16x128xf32> to vector<16xf32>
    %27 = vector.shape_cast %26 : vector<16xf32> to vector<16x1xf32>
    %28 = arith.subf %21, %27 : vector<16x1xf32>
    %c65_i32_10 = arith.constant 65 : i32
    %29 = vector.broadcast %c65_i32_10 : i32 to vector<16x128xi32>
    %30 = arith.cmpi eq, %2, %29 : vector<16x128xi32>
    %31 = vector.shape_cast %28 : vector<16x1xf32> to vector<16x1xf32>
    %32 = vector.broadcast %31 : vector<16x1xf32> to vector<16x128xf32>
    %33 = arith.select %30, %32, %8 : vector<16x128xi1>, vector<16x128xf32>
    %c0_11 = arith.constant 0 : index
    %c0_12 = arith.constant 0 : index
    %34 = vector.load %arg4[%c0_11, %c0_12] : memref<16x128xf32, #tpu.memory_space<vmem>>, vector<16x128xf32>
    tpu.vector_store %arg4[%c0_11, %c0_12], %33 {strides = array<i32>} : memref<16x128xf32, #tpu.memory_space<vmem>>, vector<16x128xf32>,
    return
  }
  func.func @transform_0(%arg0: i32) -> (i32, i32) {
    %c0_i32 = arith.constant 0 : i32
    %c0_i32_0 = arith.constant 0 : i32
    return %arg0, %c0_i32 : i32, i32
  }
  func.func @transform_1(%arg0: i32) -> (i32, i32) {
    %c0_i32 = arith.constant 0 : i32
    %c0_i32_0 = arith.constant 0 : i32
    return %arg0, %c0_i32 : i32, i32
  }
  func.func @transform_2(%arg0: i32) -> (i32, i32) {
    %c0_i32 = arith.constant 0 : i32
    %c0_i32_0 = arith.constant 0 : i32
    %c0_i32_1 = arith.constant 0 : i32
    return %c0_i32, %c0_i32_0 : i32, i32
  }
  func.func @transform_3(%arg0: i32) -> (i32, i32) {
    %c0_i32 = arith.constant 0 : i32
    %c0_i32_0 = arith.constant 0 : i32
    return %arg0, %c0_i32 : i32, i32
  }
}

</mosaic_0001>

<bundles_post_ra>
// kernel: tpu_custom_call.1
= control target key start
LH: loop header
LB: loop body
LE: loop exit
PB: predicated region body
PF: predicated region fallthrough
CT: control target
= control target key end

     0   :  { %8 = vsyncpa [#allocation3], 0  ;;  %s420_s0 = inlined_call_operand.vmem [shape: s32[16,1], index: 0, kind: input, shape index: {}]   ;;  %s421_s1 = inlined_call_operand.vmem [shape: s32[16,1], index: 1, kind: input, shape index: {}]   ;;  %s422_s2 = inlined_call_operand.hbm [shape: f32[128,128], index: 2, kind: input, shape index: {}]   ;;  %s423_s3 = inlined_call_operand.hbm [shape: f32[16,128], index: 3, kind: output, shape index: {}]  }
   0x1   :  { %9 = vsyncpa [#allocation4], 0  ;;  %s352_s12 = smov [#allocation2]   ;;  %s304_s16 = scalar_lea.hbm %s422_s2, 2048 }
   0x2   :  { %s19_s13 = sshll.u32 %s352_s12, 4  ;;  %p305_p0 = scmp.ne.s32.totalorder %s422_s2, %s304_s16  ;;  %s20_s13 = int_to_ptr.vmem [resolvable:$true] %s19_s13 }
   0x3   :  { %p308_p1 = scmp.lt.u32.totalorder %s304_s16, %s422_s2 }
   0x5   :  { %p310_p2 = pnand %p308_p1, %p305_p0 }
   0x7   :  { %313 = shalt.err (!%p310_p2)
}
   0x8   :  { %s314_s21 = scalar_lea.vmem %s20_s13, 2048  ;;  %p319_p4 = scmp.lt.s32.totalorder %s20_s13, %s20_s13 }
   0x9   :  { %p315_p3 = scmp.ne.s32.totalorder %s20_s13, %s314_s21  ;;  %p320_p5 = scmp.lt.s32.totalorder %s314_s21, %s314_s21 }
   0xb   :  { %p321_p6 = por %p320_p5, %p319_p4 }
   0xd   :  { %p322_p7 = pnand %p321_p6, %p315_p3 }
   0xf   :  { %325 = shalt.err (!%p322_p7)
}
  0x10   :  { %s353_s22 = smov 128   ;;  %s354_s23 = smov 8  }
  0x11   :  { %25 = dma.hbm_to_vmem [thread:$0]  %s422_s2, 2048, %s20_s13, [#allocation3], %s353_s22, %s353_s22, %s354_s23  }
  0x12   :  { %348 = dma.done.wait [#allocation3], 2048  }
  0x13   :  { %349 = vsyncadd [#allocation3], 4294965248  ;;  %v355_v0 = vmov 0   ;;  %v29_v1 = vld [vmem:[%s420_s0] sm:$0xff]  ;;  %v48_v3 = vld [vmem:[#allocation2 + $0x8] sm:$0xff]  ;;  %v33_v28 = vlaneseq  ;;  %v356_v31 = vmov 1.0  }
  0x14   :  { %294 = vset.pattern.permute.xlu0 %v355_v0  ;;  %295 = vset.pattern.permute.xlu1 %v355_v0  ;;  %v47_v2 = vld [vmem:[#allocation2] sm:$0xff]  ;;  %v49_v4 = vld [vmem:[#allocation2 + $0x10] sm:$0xff]  ;;  %v30_v5 = vld [vmem:[%s420_s0 + $0x8] sm:$0xff] }
  0x15   :  { %36 = vperm.xlu0 %294, %v29_v1   ;;  %v256_v6 = vpack.c.bf16 %v48_v3, %v47_v2  ;;  %v50_v7 = vld [vmem:[#allocation2 + $0x18] sm:$0xff]  ;;  %v51_v9 = vld [vmem:[#allocation2 + $0x20] sm:$0xff]  ;;  %v52_v10 = vld [vmem:[#allocation2 + $0x28] sm:$0xff]  ;;  %v34_v29 = vand.u32 127, %v33_v28 }
  0x16   :  { %v260_v8 = vpack.c.bf16 %v50_v7, %v49_v4  ;;  %v31_v11 = vld [vmem:[%s421_s1] sm:$0xff]  ;;  %v264_v12 = vpack.c.bf16 %v52_v10, %v51_v9  ;;  %v53_v13 = vld [vmem:[#allocation2 + $0x30] sm:$0xff]  ;;  %v54_v14 = vld [vmem:[#allocation2 + $0x38] sm:$0xff] }
  0x17   :  { %257 = vmatprep.subr.bf16.mxu0 %v256_v6  ;;  %v268_v15 = vpack.c.bf16 %v54_v14, %v53_v13  ;;  %v55_v16 = vld [vmem:[#allocation2 + $0x40] sm:$0xff]  ;;  %v56_v17 = vld [vmem:[#allocation2 + $0x48] sm:$0xff]  ;;  %v57_v19 = vld [vmem:[#allocation2 + $0x50] sm:$0xff]  ;;  %vm138_vm2 = vcmp.lt.s32.totalorder %v34_v29, 65  ;;  %vm177_vm5 = vcmp.eq.s32.totalorder %v34_v29, 65 }
  0x18   :  { %259 = vmatpush3.bf16.msra.mxu0 %v256_v6  ;;  %v272_v18 = vpack.c.bf16 %v56_v17, %v55_v16  ;;  %v58_v20 = vld [vmem:[#allocation2 + $0x58] sm:$0xff]  ;;  %v59_v22 = vld [vmem:[#allocation2 + $0x60] sm:$0xff]  ;;  %v60_v23 = vld [vmem:[#allocation2 + $0x68] sm:$0xff] }
  0x19   :  { %39 = vperm.xlu0 %294, %v30_v5   ;;  %261 = vmatprep.subr.bf16.mxu0 %v260_v8  ;;  %v276_v21 = vpack.c.bf16 %v58_v20, %v57_v19  ;;  %v280_v24 = vpack.c.bf16 %v60_v23, %v59_v22  ;;  %v61_v25 = vld [vmem:[#allocation2 + $0x70] sm:$0xff]  ;;  %v62_v26 = vld [vmem:[#allocation2 + $0x78] sm:$0xff]  ;;  %v32_v37 = vld [vmem:[%s421_s1 + $0x8] sm:$0xff]  ;;  %s357_s1 = smov [#allocation5]  }
  0x1a   :  { %v284_v27 = vpack.c.bf16 %v62_v26, %v61_v25  ;;  %s187_s5 = sshll.u32 %s357_s1, 4  ;;  %s188_s5 = int_to_ptr.vmem [resolvable:$true] %s187_s5 }
  0x1b   :  { %s326_s6 = scalar_lea.vmem %s188_s5, 256  ;;  %p331_p9 = scmp.lt.s32.totalorder %s188_s5, %s188_s5 }
  0x1c   :  { %263 = vmatpush3.bf16.msra.mxu0 %v260_v8  ;;  %p327_p8 = scmp.ne.s32.totalorder %s188_s5, %s326_s6  ;;  %p332_p10 = scmp.lt.s32.totalorder %s326_s6, %s326_s6 }
  0x1d   :  { %162 = vperm.xlu0 %294, %v31_v11   ;;  %265 = vmatprep.subr.bf16.mxu0 %v264_v12 }
  0x1e   :  { %p333_p11 = por %p332_p10, %p331_p9 }
  0x20   :  { %267 = vmatpush3.bf16.msra.mxu0 %v264_v12  ;;  %p334_p12 = pnand %p333_p11, %p327_p8 }
  0x21   :  { %269 = vmatprep.subr.bf16.mxu0 %v268_v15 }
  0x24   :  { %271 = vmatpush3.bf16.msra.mxu0 %v268_v15 }
  0x25   :  { %273 = vmatprep.subr.bf16.mxu0 %v272_v18 }
  0x28   :  { %275 = vmatpush3.bf16.msra.mxu0 %v272_v18 }
  0x29   :  { %277 = vmatprep.subr.bf16.mxu0 %v276_v21 }
  0x2c   :  { %279 = vmatpush3.bf16.msra.mxu0 %v276_v21 }
  0x2d   :  { %281 = vmatprep.subr.bf16.mxu0 %v280_v24 }
  0x30   :  { %283 = vmatpush3.bf16.msra.mxu0 %v280_v24 }
  0x31   :  { %285 = vmatprep.subr.bf16.mxu0 %v284_v27 }
  0x34   :  { %287 = vmatpush3.bf16.msra.mxu0 %v284_v27 }
  0x94   :  { %v37_v30 = vpop.permute.xlu0 %36 }
  0x95   :  { %vm41_vm0 = vcmp.eq.s32.totalorder %v37_v30, %v34_v29 }
  0x96   :  { %253 = vmatprep.mubr.msk.f32.mxu0 %vm41_vm0, %v356_v31 }
  0x98   :  { %v40_v32 = vpop.permute.xlu0 %39 }
  0x99   :  { %vm42_vm1 = vcmp.eq.s32.totalorder %v40_v32, %v34_v29 }
  0x9a   :  { %254 = vmatmul.mubr.msk.f32.vlgmr.msra.gmra.mrb[0].mxu0 %vm42_vm1, %v356_v31 }
  0x9c   :  { %v163_v46 = vpop.permute.xlu0 %162 }
  0x9d   :  { %vm167_vm3 = vcmp.eq.s32.totalorder %v163_v46, %v34_v29 }
 0x16d   :  { %v255_v33 = vpop.f32.mrb[0].mxu0 }
 0x16e   :  { %v129_v34 = vpop.f32.mrb[1].mxu0  ;;  %v140_v35 = vsel %vm138_vm2, %v255_v33, -inf }
 0x16f   :  { %143 = vmax.xlane.f32.xlu1 %v140_v35  ;;  %v139_v36 = vsel %vm138_vm2, %v129_v34, -inf  ;;  %v169_v48 = vsel %vm167_vm3, %v129_v34, 0.0 }
 0x173   :  { %141 = vmax.xlane.f32.xlu1 %v139_v36 }
 0x184   :  { %165 = vperm.xlu1 %295, %v32_v37  }
 0x1fc   :  { %v144_v38 = vpop.xlane.xlu1 %143 }
 0x1fd   :  { %v146_v39 = vsub.f32 %v140_v35, %v144_v38 }
 0x1ff   :  { %v149_v40 = vmul.f32 1.442695, %v146_v39 }
 0x200   :  { %v142_v41 = vpop.xlane.xlu1 %141 }
 0x201   :  { %296 = vpow2.f32 %v149_v40  ;;  %v145_v42 = vsub.f32 %v139_v36, %v142_v41 }
 0x203   :  { %v147_v43 = vmul.f32 1.442695, %v145_v42 }
 0x204   :  { %v166_v47 = vpop.permute.xlu1 %165 }
 0x205   :  { %298 = vpow2.f32 %v147_v43  ;;  %vm168_vm4 = vcmp.eq.s32.totalorder %v166_v47, %v34_v29 }
 0x206   :  { %v170_v49 = vsel %vm168_vm4, %v255_v33, 0.0 }
 0x20b   :  { %v297_v44 = vpop.eup %296 }
 0x20c   :  { %153 = vadd.xlane.f32.xlu1 %v297_v44 }
 0x20f   :  { %v299_v45 = vpop.eup %298 }
 0x210   :  { %151 = vadd.xlane.f32.xlu0 %v299_v45 }
 0x214   :  { %171 = vadd.xlane.f32.xlu0 %v169_v48 }
 0x218   :  { %173 = vadd.xlane.f32.xlu0 %v170_v49 }
 0x299   :  { %v154_v50 = vpop.xlane.xlu1 %153 }
 0x29a   :  { %300 = vlog2.f32 %v154_v50 }
 0x29d   :  { %v152_v51 = vpop.xlane.xlu0 %151 }
 0x29e   :  { %302 = vlog2.f32 %v152_v51 }
 0x2a1   :  { %v172_v52 = vpop.xlane.xlu0 %171 }
 0x2a4   :  { %v301_v53 = vpop.eup %300 }
 0x2a5   :  { %v158_v54 = vmul.f32 0.6931472, %v301_v53  ;;  %v174_v57 = vpop.xlane.xlu0 %173 }
 0x2a7   :  { %v160_v55 = vadd.f32 %v158_v54, %v144_v38 }
 0x2a8   :  { %v303_v56 = vpop.eup %302 }
 0x2a9   :  { %v156_v58 = vmul.f32 0.6931472, %v303_v56  ;;  %v176_v59 = vsub.f32 %v160_v55, %v174_v57 }
 0x2ab   :  { %v159_v60 = vadd.f32 %v156_v58, %v142_v41  ;;  %v179_v61 = vsel %vm177_vm5, %v176_v59, %v255_v33 }
 0x2ac   :  { %181 = vst [vmem:[#allocation5 + $0x8] sm:$0xff] %v179_v61 }
 0x2ad   :  { %v175_v62 = vsub.f32 %v159_v60, %v172_v52 }
 0x2af   :  { %v178_v63 = vsel %vm177_vm5, %v175_v62, %v129_v34 }
 0x2b0   :  { %180 = vst [vmem:[#allocation5] sm:$0xff] %v178_v63 }
 0x2b1   :  { %337 = shalt.err (!%p334_p12)
}
 0x2b2   :  { %s338_s9 = scalar_lea.hbm %s423_s3, 256 }
 0x2b3   :  { %p339_p13 = scmp.ne.s32.totalorder %s423_s3, %s338_s9  ;;  %p342_p0 = scmp.lt.u32.totalorder %s338_s9, %s423_s3 }
 0x2b5   :  { %p344_p1 = pnand %p342_p0, %p339_p13 }
 0x2b7   :  { %347 = shalt.err (!%p344_p1)
}
 0x2b8   :  { %193 = dma.vmem_to_hbm [thread:$0]  %s188_s5, 256, %s423_s3, [#allocation4], %s353_s22, %s353_s22, %s354_s23  }
 0x2b9   :  { %350 = dma.done.wait [#allocation4], 256  }
 0x2ba   :  { %351 = vsyncadd [#allocation4], 4294967040 }
 0x2bb   :  { %197 = vsyncpa [#allocation3], 1 }
 0x2bc   :  { %198 = vsyncpa [#allocation4], 1 }

</bundles_post_ra>
